<compile_context>
chip_gen: v5e
topology: v5e:2x2
jax: 0.10.0
libtpu: 0.0.40
codegen_flags: <defaults>
</compile_context>

<pallas_src>
import functools
import math

import jax
import jax.numpy as jnp
from jax.experimental import pallas as pl
from jax.experimental.pallas import tpu as pltpu

_HALF_LOG_2PI = 0.5 * math.log(2.0 * math.pi)


def _round_up(x: int, m: int) -> int:
    return ((x + m - 1) // m) * m


# -----------------------------------------------------------------------------
# Kernel
# -----------------------------------------------------------------------------
def _actor_kernel(data_ref, p_ref, out_ref, *, P, Ap, A, max_action):
    # data_ref : [tm, P + Ap]   lanes [0:P)  = state (zero padded)
    #                           lanes [P:)   = noise (zero padded)
    # p_ref    : [8 + 4P, C]    rows [0:8)   = biases (b1,b2,b3,b_head)
    #                           rows [8+kP : 8+(k+1)P) = W1,W2,W3,W_head
    # out_ref  : [tm, 4*Ap]     act | mu | std | log_prob  (128-aligned segs)
    d = data_ref[...]
    x = d[:, :P]                     # [tm, P]
    eps = d[:, P:]                   # [tm, Ap]

    b_blk = p_ref[pl.ds(0, 8), :]    # single aligned load of all biases
    b1 = b_blk[0:1, :P]
    b2 = b_blk[1:2, :P]
    b3 = b_blk[2:3, :P]
    bh = b_blk[3:4, :2 * Ap]

    w1 = p_ref[pl.ds(8, P), pl.ds(0, P)]
    w2 = p_ref[pl.ds(8 + P, P), pl.ds(0, P)]
    w3 = p_ref[pl.ds(8 + 2 * P, P), pl.ds(0, P)]
    wh = p_ref[pl.ds(8 + 3 * P, P), pl.ds(0, 2 * Ap)]

    # trunk: Linear -> ReLU (x3); all padding is zero so padded lanes stay 0.
    h = jnp.maximum(jnp.dot(x, w1, preferred_element_type=jnp.float32) + b1, 0.0)
    h = jnp.maximum(jnp.dot(h, w2, preferred_element_type=jnp.float32) + b2, 0.0)
    h = jnp.maximum(jnp.dot(h, w3, preferred_element_type=jnp.float32) + b3, 0.0)

    # fused mu | log_sigma head: one matmul, split at a vreg boundary.
    head = jnp.dot(h, wh, preferred_element_type=jnp.float32) + bh   # [tm, 2*Ap]
    mu = head[:, :Ap]                                                # 0 beyond A
    log_sigma = jnp.clip(head[:, Ap:], -5.0, 2.0)                    # 0 beyond A
    std = jnp.exp(log_sigma)                                         # 1 beyond A

    # rsample: action = mu + std * eps   (eps == 0 -> deterministic / mu)
    action = mu + std * eps
    tanh_a = jnp.tanh(action)                                        # 0 beyond A

    # valid-action lane mask (padding lanes contribute nothing to log_prob).
    lane = jax.lax.broadcasted_iota(jnp.int32, (1, Ap), 1)
    mask = (lane < A).astype(jnp.float32)

    # Normal(mu, std).log_prob(action) with z == eps, + tanh correction.
    lp_elem = mask * (
        -0.5 * eps * eps
        - log_sigma
        - _HALF_LOG_2PI
        - jnp.log(1.0 - tanh_a * tanh_a + 1e-6)
    )
    log_prob = jnp.sum(lp_elem, axis=-1, keepdims=True)              # [tm, 1]

    # lane-dense output slab: four aligned, unmasked full-vreg stores.
    out_ref[:, pl.ds(0, Ap)] = tanh_a * max_action
    out_ref[:, pl.ds(Ap, Ap)] = mu
    out_ref[:, pl.ds(2 * Ap, Ap)] = std * mask
    out_ref[:, pl.ds(3 * Ap, Ap)] = jnp.broadcast_to(
        log_prob, (log_prob.shape[0], Ap))


# -----------------------------------------------------------------------------
# One-time parameter packing (init/host time, NOT per call)
# -----------------------------------------------------------------------------
def pack_actor_params(params, state_dim, hidden_dim, action_dim):
    S, H, A = state_dim, hidden_dim, action_dim
    P = max(_round_up(S, 128), _round_up(H, 128))
    Ap = _round_up(A, 128)
    C = max(P, 2 * Ap)
    R = 8 + 4 * P

    blob = jnp.zeros((R, C), jnp.float32)
    # biases (one row each inside an 8-row aligned block)
    blob = blob.at[0, :H].set(params["b1"].reshape(-1))
    blob = blob.at[1, :H].set(params["b2"].reshape(-1))
    blob = blob.at[2, :H].set(params["b3"].reshape(-1))
    blob = blob.at[3, :A].set(params["b_mu"].reshape(-1))
    blob = blob.at[3, Ap:Ap + A].set(params["b_ls"].reshape(-1))
    # weights, zero-padded to (P, *) blocks
    blob = blob.at[8:8 + S, :H].set(params["w1"])
    blob = blob.at[8 + P:8 + P + H, :H].set(params["w2"])
    blob = blob.at[8 + 2 * P:8 + 2 * P + H, :H].set(params["w3"])
    # fused head: w_mu in lanes [0:A), w_ls in lanes [Ap:Ap+A)
    blob = blob.at[8 + 3 * P:8 + 3 * P + H, :A].set(params["w_mu"])
    blob = blob.at[8 + 3 * P:8 + 3 * P + H, Ap:Ap + A].set(params["w_ls"])
    return blob


# -----------------------------------------------------------------------------
# Wrapper
# -----------------------------------------------------------------------------
@functools.partial(jax.jit, static_argnames=("max_action",))
def actor_forward(param_blob, state, noise, max_action=1.0):
    """Returns (tanh_action * max_action, log_prob, mu, std)."""
    B, S = state.shape
    A = noise.shape[1]
    R, C = param_blob.shape
    P = (R - 8) // 4
    Ap = _round_up(A, 128)

    # batch tiling: small batches -> single tile; large batches -> 256-row
    # tiles on a parallel grid axis (shards across TCs on v7x).
    tm = 256 if B >= 256 else _round_up(B, 8)
    B_pad = _round_up(B, tm)

    data = jnp.zeros((B_pad, P + Ap), jnp.float32)
    data = data.at[:B, :S].set(state)
    data = data.at[:B, P:P + A].set(noise)

    kernel = functools.partial(
        _actor_kernel, P=P, Ap=Ap, A=A, max_action=float(max_action))

    flops = 2 * B_pad * (3 * P * P + P * 2 * Ap)
    bytes_accessed = 4 * (R * C + B_pad * (P + Ap) + B_pad * 4 * Ap)
    cost = pl.CostEstimate(flops=flops,
                           transcendentals=3 * B_pad * Ap,
                           bytes_accessed=bytes_accessed)

    out = pl.pallas_call(
        kernel,
        out_shape=jax.ShapeDtypeStruct((B_pad, 4 * Ap), jnp.float32),
        grid=(B_pad // tm,),
        in_specs=[
            pl.BlockSpec((tm, P + Ap), lambda i: (i, 0)),   # per-tile data
            pl.BlockSpec((R, C), lambda i: (0, 0)),          # resident params
        ],
        out_specs=pl.BlockSpec((tm, 4 * Ap), lambda i: (i, 0)),
        compiler_params=pltpu.CompilerParams(
            dimension_semantics=("parallel",)),
        cost_estimate=cost,
    )(data, param_blob)

    act = out[:B, :A]
    mu = out[:B, Ap:Ap + A]
    std = out[:B, 2 * Ap:2 * Ap + A]
    logp = out[:B, 3 * Ap]
    return act, logp, mu, std


# -----------------------------------------------------------------------------
# Deterministic parameter init (mirrors the PyTorch __init__ semantics)
# -----------------------------------------------------------------------------
def init_actor_params(key, state_dim, hidden_dim, action_dim):
    keys = jax.random.split(key, 10)

    def linear_w(k, fan_in, fan_out):
        bound = 1.0 / jnp.sqrt(fan_in)          # PyTorch default linear init
        return jax.random.uniform(k, (fan_in, fan_out), jnp.float32, -bound, bound)

    return {
        "w1": linear_w(keys[0], state_dim, hidden_dim),
        "b1": jnp.full((1, hidden_dim), 0.1, jnp.float32),   # constant_(bias, 0.1)
        "w2": linear_w(keys[1], hidden_dim, hidden_dim),
        "b2": jnp.full((1, hidden_dim), 0.1, jnp.float32),
        "w3": linear_w(keys[2], hidden_dim, hidden_dim),
        "b3": jnp.full((1, hidden_dim), 0.1, jnp.float32),
        # heads: uniform_(-0.001, 0.001)
        "w_mu": jax.random.uniform(keys[3], (hidden_dim, action_dim), jnp.float32, -1e-3, 1e-3),
        "b_mu": jax.random.uniform(keys[4], (1, action_dim), jnp.float32, -1e-3, 1e-3),
        "w_ls": jax.random.uniform(keys[5], (hidden_dim, action_dim), jnp.float32, -1e-3, 1e-3),
        "b_ls": jax.random.uniform(keys[6], (1, action_dim), jnp.float32, -1e-3, 1e-3),
    }


# -----------------------------------------------------------------------------
# Pure-JAX reference (for a quick sanity check)
# -----------------------------------------------------------------------------
def actor_forward_ref(params, state, noise, max_action=1.0):
    h = jnp.maximum(state @ params["w1"] + params["b1"], 0.0)
    h = jnp.maximum(h @ params["w2"] + params["b2"], 0.0)
    h = jnp.maximum(h @ params["w3"] + params["b3"], 0.0)
    mu = h @ params["w_mu"] + params["b_mu"]
    log_sigma = jnp.clip(h @ params["w_ls"] + params["b_ls"], -5.0, 2.0)
    std = jnp.exp(log_sigma)
    action = mu + std * noise
    tanh_a = jnp.tanh(action)
    z = (action - mu) / std
    lp = jnp.sum(-0.5 * z * z - log_sigma - _HALF_LOG_2PI, axis=-1)
    lp = lp - jnp.sum(jnp.log(1.0 - tanh_a ** 2 + 1e-6), axis=-1)
    return tanh_a * max_action, lp, mu, std


if __name__ == "__main__":
    # Small shapes consistent with Actor(state_dim, action_dim, hidden_dim)
    batch, state_dim, hidden_dim, action_dim = 8, 16, 32, 8
    max_action = 1.0

    root = jax.random.PRNGKey(0)
    k_params, k_state, k_noise = jax.random.split(root, 3)

    params = init_actor_params(k_params, state_dim, hidden_dim, action_dim)
    # pack once (init/host time), reused on every forward call
    param_blob = pack_actor_params(params, state_dim, hidden_dim, action_dim)

    state = jax.random.normal(k_state, (batch, state_dim), jnp.float32)
    # stochastic path (rsample); pass zeros for deterministic=True
    noise = jax.random.normal(k_noise, (batch, action_dim), jnp.float32)

    act, logp, mu, std = actor_forward(param_blob, state, noise,
                                       max_action=max_action)
    jax.block_until_ready((act, logp, mu, std))

    # sanity check vs pure-JAX reference
    act_r, logp_r, mu_r, std_r = actor_forward_ref(params, state, noise, max_action)
    assert jnp.allclose(act, act_r, atol=1e-4), "action mismatch"
    assert jnp.allclose(logp, logp_r, atol=1e-4), "log_prob mismatch"
    assert jnp.allclose(mu, mu_r, atol=1e-4), "mu mismatch"
    assert jnp.allclose(std, std_r, atol=1e-4), "std mismatch"

    print("KERNEL_OK")
</pallas_src>

<mosaic_0001>
module attributes {stable_mosaic.version = 11 : i64} {
  func.func @_actor_kernel(%arg0: i32, %arg1: memref<8x256xf32, #tpu.memory_space<vmem>>, %arg2: memref<520x256xf32, #tpu.memory_space<vmem>>, %arg3: memref<8x512xf32, #tpu.memory_space<vmem>>) attributes {dimension_semantics = [#tpu.dimension_semantics<parallel>], iteration_bounds = array<i64: 1>, scalar_prefetch = 0 : i64, scratch_operands = 0 : i64, tpu.core_type = #tpu.core_type<tc>, window_params = [{transform_indices = @transform_0, window_bounds = array<i64: 8, 256>}, {pipeline_mode = #tpu.pipeline_mode<synchronous>, transform_indices = @transform_1, window_bounds = array<i64: 520, 256>}, {transform_indices = @transform_2, window_bounds = array<i64: 8, 512>}]} {
    %c0 = arith.constant 0 : index
    %c0_0 = arith.constant 0 : index
    %0 = vector.load %arg1[%c0, %c0_0] : memref<8x256xf32, #tpu.memory_space<vmem>>, vector<8x256xf32>
    %1 = vector.extract_strided_slice %0 {offsets = [0, 0], sizes = [8, 128], strides = [1, 1]} : vector<8x256xf32> to vector<8x128xf32>
    %2 = vector.extract_strided_slice %0 {offsets = [0, 128], sizes = [8, 128], strides = [1, 1]} : vector<8x256xf32> to vector<8x128xf32>
    %c0_1 = arith.constant 0 : index
    %c0_2 = arith.constant 0 : index
    %3 = vector.load %arg2[%c0_1, %c0_2] : memref<520x256xf32, #tpu.memory_space<vmem>>, vector<8x256xf32>
    %4 = vector.extract_strided_slice %3 {offsets = [0, 0], sizes = [1, 128], strides = [1, 1]} : vector<8x256xf32> to vector<1x128xf32>
    %5 = vector.extract_strided_slice %3 {offsets = [1, 0], sizes = [1, 128], strides = [1, 1]} : vector<8x256xf32> to vector<1x128xf32>
    %6 = vector.extract_strided_slice %3 {offsets = [2, 0], sizes = [1, 128], strides = [1, 1]} : vector<8x256xf32> to vector<1x128xf32>
    %7 = vector.extract_strided_slice %3 {offsets = [3, 0], sizes = [1, 256], strides = [1, 1]} : vector<8x256xf32> to vector<1x256xf32>
    %c8 = arith.constant 8 : index
    %c0_3 = arith.constant 0 : index
    %8 = vector.load %arg2[%c8, %c0_3] : memref<520x256xf32, #tpu.memory_space<vmem>>, vector<128x128xf32>
    %c136 = arith.constant 136 : index
    %c0_4 = arith.constant 0 : index
    %9 = vector.load %arg2[%c136, %c0_4] : memref<520x256xf32, #tpu.memory_space<vmem>>, vector<128x128xf32>
    %c264 = arith.constant 264 : index
    %c0_5 = arith.constant 0 : index
    %10 = vector.load %arg2[%c264, %c0_5] : memref<520x256xf32, #tpu.memory_space<vmem>>, vector<128x128xf32>
    %c392 = arith.constant 392 : index
    %c0_6 = arith.constant 0 : index
    %11 = vector.load %arg2[%c392, %c0_6] : memref<520x256xf32, #tpu.memory_space<vmem>>, vector<128x256xf32>
    %cst = arith.constant dense<0.000000e+00> : vector<8x128xf32>
    %12 = tpu.matmul %1, %8, %cst {dimension_numbers = #tpu.dot_dimension_numbers<[1], [0], [0], [1], [0, 0, 1, 1], [], []>} : vector<8x128xf32>, vector<128x128xf32>, vector<8x128xf32> -> vector<8x128xf32>
    %13 = vector.broadcast %4 : vector<1x128xf32> to vector<8x128xf32>
    %14 = arith.addf %12, %13 : vector<8x128xf32>
    %cst_7 = arith.constant 0.000000e+00 : f32
    %15 = vector.broadcast %cst_7 : f32 to vector<8x128xf32>
    %16 = arith.maximumf %14, %15 : vector<8x128xf32>
    %cst_8 = arith.constant dense<0.000000e+00> : vector<8x128xf32>
    %17 = tpu.matmul %16, %9, %cst_8 {dimension_numbers = #tpu.dot_dimension_numbers<[1], [0], [0], [1], [0, 0, 1, 1], [], []>} : vector<8x128xf32>, vector<128x128xf32>, vector<8x128xf32> -> vector<8x128xf32>
    %18 = vector.broadcast %5 : vector<1x128xf32> to vector<8x128xf32>
    %19 = arith.addf %17, %18 : vector<8x128xf32>
    %cst_9 = arith.constant 0.000000e+00 : f32
    %20 = vector.broadcast %cst_9 : f32 to vector<8x128xf32>
    %21 = arith.maximumf %19, %20 : vector<8x128xf32>
    %cst_10 = arith.constant dense<0.000000e+00> : vector<8x128xf32>
    %22 = tpu.matmul %21, %10, %cst_10 {dimension_numbers = #tpu.dot_dimension_numbers<[1], [0], [0], [1], [0, 0, 1, 1], [], []>} : vector<8x128xf32>, vector<128x128xf32>, vector<8x128xf32> -> vector<8x128xf32>
    %23 = vector.broadcast %6 : vector<1x128xf32> to vector<8x128xf32>
    %24 = arith.addf %22, %23 : vector<8x128xf32>
    %cst_11 = arith.constant 0.000000e+00 : f32
    %25 = vector.broadcast %cst_11 : f32 to vector<8x128xf32>
    %26 = arith.maximumf %24, %25 : vector<8x128xf32>
    %cst_12 = arith.constant dense<0.000000e+00> : vector<8x256xf32>
    %27 = tpu.matmul %26, %11, %cst_12 {dimension_numbers = #tpu.dot_dimension_numbers<[1], [0], [0], [1], [0, 0, 1, 1], [], []>} : vector<8x128xf32>, vector<128x256xf32>, vector<8x256xf32> -> vector<8x256xf32>
    %28 = vector.broadcast %7 : vector<1x256xf32> to vector<8x256xf32>
    %29 = arith.addf %27, %28 : vector<8x256xf32>
    %30 = vector.extract_strided_slice %29 {offsets = [0, 0], sizes = [8, 128], strides = [1, 1]} : vector<8x256xf32> to vector<8x128xf32>
    %31 = vector.extract_strided_slice %29 {offsets = [0, 128], sizes = [8, 128], strides = [1, 1]} : vector<8x256xf32> to vector<8x128xf32>
    %cst_13 = arith.constant -5.000000e+00 : f32
    %cst_14 = arith.constant 2.000000e+00 : f32
    %32 = vector.broadcast %cst_13 : f32 to vector<8x128xf32>
    %33 = arith.maximumf %32, %31 : vector<8x128xf32>
    %34 = vector.broadcast %cst_14 : f32 to vector<8x128xf32>
    %35 = arith.minimumf %34, %33 : vector<8x128xf32>
    %36 = math.exp %35 : vector<8x128xf32>
    %37 = arith.mulf %36, %2 : vector<8x128xf32>
    %38 = arith.addf %30, %37 : vector<8x128xf32>
    %39 = math.tanh %38 : vector<8x128xf32>
    %40 = tpu.iota {dimensions = array<i32: 1>} : vector<1x128xi32>
    %c8_i32 = arith.constant 8 : i32
    %41 = vector.broadcast %c8_i32 : i32 to vector<1x128xi32>
    %42 = arith.cmpi slt, %40, %41 : vector<1x128xi32>
    %43 = arith.extui %42 : vector<1x128xi1> to vector<1x128xi32>
    %44 = arith.sitofp %43 : vector<1x128xi32> to vector<1x128xf32>
    %cst_15 = arith.constant -5.000000e-01 : f32
    %45 = vector.broadcast %cst_15 : f32 to vector<8x128xf32>
    %46 = arith.mulf %45, %2 : vector<8x128xf32>
    %47 = arith.mulf %46, %2 : vector<8x128xf32>
    %48 = arith.subf %47, %35 : vector<8x128xf32>
    %cst_16 = arith.constant 0.918938517 : f32
    %49 = vector.broadcast %cst_16 : f32 to vector<8x128xf32>
    %50 = arith.subf %48, %49 : vector<8x128xf32>
    %51 = arith.mulf %39, %39 : vector<8x128xf32>
    %cst_17 = arith.constant 1.000000e+00 : f32
    %52 = vector.broadcast %cst_17 : f32 to vector<8x128xf32>
    %53 = arith.subf %52, %51 : vector<8x128xf32>
    %cst_18 = arith.constant 9.99999997E-7 : f32
    %54 = vector.broadcast %cst_18 : f32 to vector<8x128xf32>
    %55 = arith.addf %53, %54 : vector<8x128xf32>
    %56 = math.log %55 : vector<8x128xf32>
    %57 = arith.subf %50, %56 : vector<8x128xf32>
    %58 = vector.broadcast %44 : vector<1x128xf32> to vector<8x128xf32>
    %59 = arith.mulf %58, %57 : vector<8x128xf32>
    %cst_19 = arith.constant dense<0.000000e+00> : vector<8xf32>
    %60 = vector.multi_reduction <add>, %59, %cst_19 [1] : vector<8x128xf32> to vector<8xf32>
    %61 = vector.shape_cast %60 : vector<8xf32> to vector<8x1xf32>
    %cst_20 = arith.constant 1.000000e+00 : f32
    %62 = vector.broadcast %cst_20 : f32 to vector<8x128xf32>
    %63 = arith.mulf %39, %62 : vector<8x128xf32>
    %c0_21 = arith.constant 0 : index
    %c0_22 = arith.constant 0 : index
    %64 = vector.load %arg3[%c0_21, %c0_22] : memref<8x512xf32, #tpu.memory_space<vmem>>, vector<8x128xf32>
    tpu.vector_store %arg3[%c0_21, %c0_22], %63 {strides = array<i32>} : memref<8x512xf32, #tpu.memory_space<vmem>>, vector<8x128xf32>,
    %c0_23 = arith.constant 0 : index
    %c128 = arith.constant 128 : index
    %65 = vector.load %arg3[%c0_23, %c128] : memref<8x512xf32, #tpu.memory_space<vmem>>, vector<8x128xf32>
    tpu.vector_store %arg3[%c0_23, %c128], %30 {strides = array<i32>} : memref<8x512xf32, #tpu.memory_space<vmem>>, vector<8x128xf32>,
    %66 = vector.broadcast %44 : vector<1x128xf32> to vector<8x128xf32>
    %67 = arith.mulf %36, %66 : vector<8x128xf32>
    %c0_24 = arith.constant 0 : index
    %c256 = arith.constant 256 : index
    %68 = vector.load %arg3[%c0_24, %c256] : memref<8x512xf32, #tpu.memory_space<vmem>>, vector<8x128xf32>
    tpu.vector_store %arg3[%c0_24, %c256], %67 {strides = array<i32>} : memref<8x512xf32, #tpu.memory_space<vmem>>, vector<8x128xf32>,
    %69 = vector.shape_cast %61 : vector<8x1xf32> to vector<8x1xf32>
    %70 = vector.broadcast %69 : vector<8x1xf32> to vector<8x128xf32>
    %c0_25 = arith.constant 0 : index
    %c384 = arith.constant 384 : index
    %71 = vector.load %arg3[%c0_25, %c384] : memref<8x512xf32, #tpu.memory_space<vmem>>, vector<8x128xf32>
    tpu.vector_store %arg3[%c0_25, %c384], %70 {strides = array<i32>} : memref<8x512xf32, #tpu.memory_space<vmem>>, vector<8x128xf32>,
    return
  }
  func.func @transform_0(%arg0: i32) -> (i32, i32) {
    %c0_i32 = arith.constant 0 : i32
    %c0_i32_0 = arith.constant 0 : i32
    return %arg0, %c0_i32 : i32, i32
  }
  func.func @transform_1(%arg0: i32) -> (i32, i32) {
    %c0_i32 = arith.constant 0 : i32
    %c0_i32_0 = arith.constant 0 : i32
    %c0_i32_1 = arith.constant 0 : i32
    return %c0_i32, %c0_i32_0 : i32, i32
  }
  func.func @transform_2(%arg0: i32) -> (i32, i32) {
    %c0_i32 = arith.constant 0 : i32
    %c0_i32_0 = arith.constant 0 : i32
    return %arg0, %c0_i32 : i32, i32
  }
}

</mosaic_0001>

<bundles_post_ra>
// kernel: actor_forward.1
= control target key start
LH: loop header
LB: loop body
LE: loop exit
PB: predicated region body
PF: predicated region fallthrough
CT: control target
= control target key end

     0   :  { %7 = vsyncpa [#allocation3], 0  ;;  %s292_s12 = smov [#allocation2]   ;;  %s293_s14 = smov 256   ;;  %s338_s0 = inlined_call_operand.vmem [shape: f32[8,256], index: 0, kind: input, shape index: {}]   ;;  %s339_s1 = inlined_call_operand.hbm [shape: f32[520,256], index: 1, kind: input, shape index: {}]   ;;  %s340_s2 = inlined_call_operand.vmem [shape: f32[8,512], index: 2, kind: output, shape index: {}]  }
   0x1   :  { %s14_s11 = sshll.u32 %s339_s1, 4  ;;  %s16_s13 = sshll.u32 %s292_s12, 4  ;;  %s15_s11 = int_to_ptr.hbm [resolvable:$true] %s14_s11  ;;  %s17_s13 = int_to_ptr.vmem [resolvable:$true] %s16_s13 }
   0x2   :  { %s294_s15 = smov 16  }
   0x3   :  { %22 = dma.hbm_to_vmem [thread:$0]  %s15_s11, 16640, %s17_s13, [#allocation3], %s293_s14, %s293_s14, %s294_s15  }
   0x4   :  { %290 = dma.done.wait [#allocation3], 16640  }
   0x5   :  { %291 = vsyncadd [#allocation3], 4294950656  ;;  %v46_v0 = vld [vmem:[#allocation2 + $0x100] sm:$0xff]  ;;  %v45_v1 = vld [vmem:[#allocation2 + $0xf0] sm:$0xff] }
   0x6   :  { %112 = vmatpush.msra.mxu0 %v46_v0  ;;  %v44_v2 = vld [vmem:[#allocation2 + $0xe0] sm:$0xff]  ;;  %v43_v3 = vld [vmem:[#allocation2 + $0xd0] sm:$0xff]  ;;  %v110_v55 = vld [vmem:[#allocation2 + $0x408] sm:$0xff] }
   0x7   :  { %v62_v4 = vld [vmem:[#allocation2 + $0x200] sm:$0xff]  ;;  %v61_v6 = vld [vmem:[#allocation2 + $0x1f0] sm:$0xff]  ;;  %v108_v57 = vld [vmem:[#allocation2 + $0x3f8] sm:$0xff] }
   0x8   :  { %113 = vmatpush.msra.mxu0 %v45_v1  ;;  %v42_v5 = vld [vmem:[#allocation2 + $0xc0] sm:$0xff]  ;;  %134 = vmatpush.msra.mxu1 %v62_v4  ;;  %v41_v8 = vld [vmem:[#allocation2 + $0xb0] sm:$0xff]  ;;  %v106_v59 = vld [vmem:[#allocation2 + $0x3e8] sm:$0xff] }
   0x9   :  { %v60_v7 = vld [vmem:[#allocation2 + $0x1e0] sm:$0xff]  ;;  %v59_v9 = vld [vmem:[#allocation2 + $0x1d0] sm:$0xff]  ;;  %v104_v61 = vld [vmem:[#allocation2 + $0x3d8] sm:$0xff] }
   0xa   :  { %114 = vmatpush.msra.mxu0 %v44_v2  ;;  %135 = vmatpush.msra.mxu1 %v61_v6  ;;  %v40_v10 = vld [vmem:[#allocation2 + $0xa0] sm:$0xff]  ;;  %v39_v12 = vld [vmem:[#allocation2 + $0x90] sm:$0xff]  ;;  %v102_v63 = vld [vmem:[#allocation2 + $0x3c8] sm:$0xff] }
   0xb   :  { %v58_v11 = vld [vmem:[#allocation2 + $0x1c0] sm:$0xff]  ;;  %v57_v13 = vld [vmem:[#allocation2 + $0x1b0] sm:$0xff]  ;;  %v100_v1 = vld [vmem:[#allocation2 + $0x3b8] sm:$0xff] }
   0xc   :  { %115 = vmatpush.msra.mxu0 %v43_v3  ;;  %136 = vmatpush.msra.mxu1 %v60_v7  ;;  %v38_v14 = vld [vmem:[#allocation2 + $0x80] sm:$0xff]  ;;  %v37_v16 = vld [vmem:[#allocation2 + $0x70] sm:$0xff]  ;;  %v98_v3 = vld [vmem:[#allocation2 + $0x3a8] sm:$0xff] }
   0xd   :  { %v56_v15 = vld [vmem:[#allocation2 + $0x1a0] sm:$0xff]  ;;  %v55_v17 = vld [vmem:[#allocation2 + $0x190] sm:$0xff]  ;;  %v94_v7 = vld [vmem:[#allocation2 + $0x388] sm:$0xff] }
   0xe   :  { %116 = vmatpush.msra.mxu0 %v42_v5  ;;  %137 = vmatpush.msra.mxu1 %v59_v9  ;;  %v36_v18 = vld [vmem:[#allocation2 + $0x60] sm:$0xff]  ;;  %v35_v20 = vld [vmem:[#allocation2 + $0x50] sm:$0xff]  ;;  %v96_v5 = vld [vmem:[#allocation2 + $0x398] sm:$0xff] }
   0xf   :  { %v54_v19 = vld [vmem:[#allocation2 + $0x180] sm:$0xff]  ;;  %v53_v21 = vld [vmem:[#allocation2 + $0x170] sm:$0xff]  ;;  %v92_v9 = vld [vmem:[#allocation2 + $0x378] sm:$0xff] }
  0x10   :  { %117 = vmatpush.msra.mxu0 %v41_v8  ;;  %138 = vmatpush.msra.mxu1 %v58_v11  ;;  %v34_v22 = vld [vmem:[#allocation2 + $0x40] sm:$0xff]  ;;  %v33_v24 = vld [vmem:[#allocation2 + $0x30] sm:$0xff]  ;;  %v90_v11 = vld [vmem:[#allocation2 + $0x368] sm:$0xff] }
  0x11   :  { %v52_v23 = vld [vmem:[#allocation2 + $0x160] sm:$0xff]  ;;  %v51_v25 = vld [vmem:[#allocation2 + $0x150] sm:$0xff] }
  0x12   :  { %118 = vmatpush.msra.mxu0 %v40_v10  ;;  %139 = vmatpush.msra.mxu1 %v57_v13  ;;  %v32_v26 = vld [vmem:[#allocation2 + $0x20] sm:$0xff]  ;;  %v31_v28 = vld [vmem:[#allocation2 + $0x10] sm:$0xff]  ;;  %v88_v13 = vld [vmem:[#allocation2 + $0x358] sm:$0xff] }
  0x13   :  { %v50_v27 = vld [vmem:[#allocation2 + $0x140] sm:$0xff]  ;;  %v49_v30 = vld [vmem:[#allocation2 + $0x130] sm:$0xff] }
  0x14   :  { %119 = vmatpush.msra.mxu0 %v39_v12  ;;  %140 = vmatpush.msra.mxu1 %v56_v15  ;;  %v27_v29 = vld [vmem:[%s338_s0] sm:$0xff]  ;;  %v47_v32 = vld [vmem:[#allocation2 + $0x110] sm:$0xff]  ;;  %v86_v15 = vld [vmem:[#allocation2 + $0x348] sm:$0xff] }
  0x15   :  { %v48_v31 = vld [vmem:[#allocation2 + $0x120] sm:$0xff]  ;;  %v77_v34 = vld [vmem:[#allocation2 + $0x2f0] sm:$0xff] }
  0x16   :  { %120 = vmatpush.msra.mxu0 %v38_v14  ;;  %141 = vmatpush.msra.mxu1 %v55_v17  ;;  %v78_v33 = vld [vmem:[#allocation2 + $0x300] sm:$0xff]  ;;  %v75_v36 = vld [vmem:[#allocation2 + $0x2d0] sm:$0xff] }
  0x17   :  { %156 = vmatpush.msra.mxu2 %v78_v33  ;;  %v76_v35 = vld [vmem:[#allocation2 + $0x2e0] sm:$0xff]  ;;  %v73_v38 = vld [vmem:[#allocation2 + $0x2b0] sm:$0xff] }
  0x18   :  { %121 = vmatpush.msra.mxu0 %v37_v16  ;;  %142 = vmatpush.msra.mxu1 %v54_v19  ;;  %v74_v37 = vld [vmem:[#allocation2 + $0x2c0] sm:$0xff]  ;;  %v71_v40 = vld [vmem:[#allocation2 + $0x290] sm:$0xff] }
  0x19   :  { %157 = vmatpush.msra.mxu2 %v77_v34  ;;  %v72_v39 = vld [vmem:[#allocation2 + $0x2a0] sm:$0xff]  ;;  %v69_v42 = vld [vmem:[#allocation2 + $0x270] sm:$0xff]  ;;  %v226_v34 = vlaneseq }
  0x1a   :  { %122 = vmatpush.msra.mxu0 %v36_v18  ;;  %143 = vmatpush.msra.mxu1 %v53_v21  ;;  %v70_v41 = vld [vmem:[#allocation2 + $0x280] sm:$0xff]  ;;  %v67_v44 = vld [vmem:[#allocation2 + $0x250] sm:$0xff]  ;;  %v84_v21 = vld [vmem:[#allocation2 + $0x338] sm:$0xff] }
  0x1b   :  { %158 = vmatpush.msra.mxu2 %v76_v35  ;;  %v68_v43 = vld [vmem:[#allocation2 + $0x260] sm:$0xff]  ;;  %v65_v51 = vld [vmem:[#allocation2 + $0x230] sm:$0xff] }
  0x1c   :  { %123 = vmatpush.msra.mxu0 %v35_v20  ;;  %144 = vmatpush.msra.mxu1 %v52_v23  ;;  %v317_v45 = vld [vmem:[#allocation2] sm:$0xff]  ;;  %v63_v53 = vld [vmem:[#allocation2 + $0x210] sm:$0xff]  ;;  %v82_v23 = vld [vmem:[#allocation2 + $0x328] sm:$0xff] }
  0x1d   :  { %159 = vmatpush.msra.mxu2 %v75_v36  ;;  %v66_v46 = vld [vmem:[#allocation2 + $0x240] sm:$0xff]  ;;  %v111_v47 = vperm.slane %v317_v45, 0  ;;  %v107_v56 = vld [vmem:[#allocation2 + $0x3f0] sm:$0xff]  ;;  %v133_v16 = vperm.slane %v317_v45, 1  ;;  %v177_v36 = vperm.slane %v317_v45, 3 }
  0x1e   :  { %124 = vmatpush.msra.mxu0 %v34_v22  ;;  %145 = vmatpush.msra.mxu1 %v51_v25  ;;  %v64_v52 = vld [vmem:[#allocation2 + $0x220] sm:$0xff]  ;;  %v103_v60 = vld [vmem:[#allocation2 + $0x3d0] sm:$0xff]  ;;  %v80_v25 = vld [vmem:[#allocation2 + $0x318] sm:$0xff] }
  0x1f   :  { %160 = vmatpush.msra.mxu2 %v74_v37  ;;  %v109_v54 = vld [vmem:[#allocation2 + $0x400] sm:$0xff]  ;;  %v99_v0 = vld [vmem:[#allocation2 + $0x3b0] sm:$0xff] }
  0x20   :  { %125 = vmatpush.msra.mxu0 %v33_v24  ;;  %146 = vmatpush.msra.mxu1 %v50_v27  ;;  %v105_v58 = vld [vmem:[#allocation2 + $0x3e0] sm:$0xff]  ;;  %v95_v4 = vld [vmem:[#allocation2 + $0x390] sm:$0xff] }
  0x21   :  { %161 = vmatpush.msra.mxu2 %v73_v38  ;;  %179 = vmatpush.msra.mxu3 %v109_v54  ;;  %v101_v62 = vld [vmem:[#allocation2 + $0x3c0] sm:$0xff]  ;;  %v91_v8 = vld [vmem:[#allocation2 + $0x370] sm:$0xff] }
  0x22   :  { %126 = vmatpush.msra.mxu0 %v32_v26  ;;  %147 = vmatpush.msra.mxu1 %v49_v30  ;;  %v97_v2 = vld [vmem:[#allocation2 + $0x3a0] sm:$0xff]  ;;  %v87_v12 = vld [vmem:[#allocation2 + $0x350] sm:$0xff]  ;;  %v155_v26 = vperm.slane %v317_v45, 2  ;;  %v30_v30 = vld [vmem:[#allocation2 + $0x8] sm:$0xff] }
  0x23   :  { %162 = vmatpush.msra.mxu2 %v72_v39  ;;  %180 = vmatpush.msra.mxu3 %v107_v56  ;;  %v93_v6 = vld [vmem:[#allocation2 + $0x380] sm:$0xff]  ;;  %v83_v20 = vld [vmem:[#allocation2 + $0x330] sm:$0xff]  ;;  %v227_v39 = vand.u32 127, %v226_v34 }
  0x24   :  { %127 = vmatpush.msra.mxu0 %v31_v28  ;;  %148 = vmatpush.msra.mxu1 %v48_v31  ;;  %v89_v10 = vld [vmem:[#allocation2 + $0x360] sm:$0xff]  ;;  %v79_v24 = vld [vmem:[#allocation2 + $0x310] sm:$0xff]  ;;  %v178_v31 = vperm.slane %v30_v30, 3 }
  0x25   :  { %128 = vmatmul.f32.vlgmr.msra.gmra.mxu0 %v27_v29  ;;  %163 = vmatpush.msra.mxu2 %v71_v40  ;;  %v85_v14 = vld [vmem:[#allocation2 + $0x340] sm:$0xff]  ;;  %vm228_vm0 = vcmp.lt.s32.totalorder %v227_v39, 8 }
  0x26   :  { %149 = vmatpush.msra.mxu1 %v47_v32  ;;  %199 = vmatpush.msrb.mxu0 %v110_v55  ;;  %v81_v22 = vld [vmem:[#allocation2 + $0x320] sm:$0xff] }
  0x27   :  { %164 = vmatpush.msra.mxu2 %v70_v41  ;;  %181 = vmatpush.msra.mxu3 %v105_v58 }
  0x28   :  { %200 = vmatpush.msrb.mxu0 %v108_v57 }
  0x29   :  { %165 = vmatpush.msra.mxu2 %v69_v42  ;;  %182 = vmatpush.msra.mxu3 %v103_v60  ;;  %v295_v42 = vmov 0.0  }
  0x2a   :  { %201 = vmatpush.msrb.mxu0 %v106_v59 }
  0x2b   :  { %166 = vmatpush.msra.mxu2 %v68_v43  ;;  %183 = vmatpush.msra.mxu3 %v101_v62  ;;  %v254_v43 = vsel %vm228_vm0, 1.0, %v295_v42 }
  0x2c   :  { %202 = vmatpush.msrb.mxu0 %v104_v61 }
  0x2d   :  { %167 = vmatpush.msra.mxu2 %v67_v44  ;;  %184 = vmatpush.msra.mxu3 %v99_v0 }
  0x2e   :  { %203 = vmatpush.msrb.mxu0 %v102_v63 }
  0x2f   :  { %168 = vmatpush.msra.mxu2 %v66_v46  ;;  %185 = vmatpush.msra.mxu3 %v97_v2  ;;  %v28_v46 = vld [vmem:[%s338_s0 + $0x8] sm:$0xff] }
  0x30   :  { %204 = vmatpush.msrb.mxu0 %v100_v1 }
  0x31   :  { %169 = vmatpush.msra.mxu2 %v65_v51  ;;  %186 = vmatpush.msra.mxu3 %v95_v4  ;;  %v231_v51 = vmul.f32 -0.5, %v28_v46 }
  0x32   :  { %205 = vmatpush.msrb.mxu0 %v98_v3 }
  0x33   :  { %170 = vmatpush.msra.mxu2 %v64_v52  ;;  %187 = vmatpush.msra.mxu3 %v93_v6  ;;  %v232_v54 = vmul.f32 %v231_v51, %v28_v46 }
  0x34   :  { %206 = vmatpush.msrb.mxu0 %v96_v5 }
  0x35   :  { %171 = vmatpush.msra.mxu2 %v63_v53  ;;  %188 = vmatpush.msra.mxu3 %v91_v8 }
  0x36   :  { %207 = vmatpush.msrb.mxu0 %v94_v7 }
  0x37   :  { %189 = vmatpush.msra.mxu3 %v89_v10 }
  0x38   :  { %208 = vmatpush.msrb.mxu0 %v92_v9 }
  0x39   :  { %190 = vmatpush.msra.mxu3 %v87_v12 }
  0x3a   :  { %209 = vmatpush.msrb.mxu0 %v90_v11 }
  0x3b   :  { %191 = vmatpush.msra.mxu3 %v85_v14 }
  0x3c   :  { %210 = vmatpush.msrb.mxu0 %v88_v13 }
  0x3d   :  { %192 = vmatpush.msra.mxu3 %v83_v20 }
  0x3e   :  { %211 = vmatpush.msrb.mxu0 %v86_v15 }
  0x3f   :  { %193 = vmatpush.msra.mxu3 %v81_v22 }
  0x40   :  { %212 = vmatpush.msrb.mxu0 %v84_v21 }
  0x41   :  { %194 = vmatpush.msra.mxu3 %v79_v24 }
  0x42   :  { %213 = vmatpush.msrb.mxu0 %v82_v23 }
  0x44   :  { %214 = vmatpush.msrb.mxu0 %v80_v25 }
  0xa2   :  { %v129_v48 = vpop.f32.mrf.mxu0 }
  0xa3   :  { %v130_v49 = vadd.f32 %v129_v48, %v111_v47 }
  0xa5   :  { %v132_v50 = vmax.f32 %v130_v49, 0.0 }
  0xa7   :  { %150 = vmatmul.f32.vlgmr.msra.gmra.mxu1 %v132_v50 }
 0x124   :  { %v151_v17 = vpop.f32.mrf.mxu1 }
 0x125   :  { %v152_v18 = vadd.f32 %v151_v17, %v133_v16 }
 0x127   :  { %v154_v19 = vmax.f32 %v152_v18, 0.0 }
 0x129   :  { %172 = vmatmul.f32.vlgmr.msra.gmra.mxu2 %v154_v19 }
 0x1ac   :  { %v173_v27 = vpop.f32.mrf.mxu2 }
 0x1ad   :  { %v174_v28 = vadd.f32 %v173_v27, %v155_v26 }
 0x1af   :  { %v176_v29 = vmax.f32 %v174_v28, 0.0 }
 0x1b1   :  { %195 = vmatmul.f32.vlgmr.msra.gmra.mxu3 %v176_v29  ;;  %215 = vmatmul.f32.vlgmr.msrb.gmra.mxu0 %v176_v29 }
 0x22e   :  { %v216_v32 = vpop.f32.mrf.mxu0 }
 0x22f   :  { %v217_v33 = vadd.f32 %v216_v32, %v178_v31 }
 0x231   :  { %v219_v35 = vmax.f32 %v217_v33, -5.0 }
 0x233   :  { %v220_v37 = vmin.f32 %v219_v35, 2.0 }
 0x234   :  { %v196_v38 = vpop.f32.mrf.mxu3 }
 0x235   :  { %v221_v40 = vmul.f32 1.442695, %v220_v37  ;;  %v197_v41 = vadd.f32 %v196_v38, %v177_v36  ;;  %v233_v55 = vsub.f32 %v232_v54, %v220_v37 }
 0x237   :  { %260 = vpow2.f32 %v221_v40  ;;  %245 = vst [vmem:[%s340_s2 + $0x8] sm:$0xff] %v197_v41  ;;  %v255_v57 = vadd.f32 -0.9189385, %v233_v55 }
 0x23d   :  { %v261_v44 = vpop.eup %260 }
 0x23e   :  { %v223_v47 = vmul.f32 %v261_v44, %v28_v46  ;;  %v246_v45 = vmul.f32 %v261_v44, %v254_v43 }
 0x240   :  { %v224_v48 = vadd.f32 %v223_v47, %v197_v41  ;;  %247 = vst [vmem:[%s340_s2 + $0x10] sm:$0xff] %v246_v45 }
 0x242   :  { %262 = vtanh.f32 %v224_v48 }
 0x248   :  { %v263_v49 = vpop.eup %262 }
 0x249   :  { %244 = vst [vmem:[%s340_s2] sm:$0xff] %v263_v49  ;;  %v235_v50 = vmul.f32 %v263_v49, %v263_v49 }
 0x24b   :  { %v236_v52 = vsub.f32 1.0, %v235_v50 }
 0x24d   :  { %v237_v53 = vadd.f32 1e-06, %v236_v52 }
 0x24f   :  { %264 = vlog2.f32 %v237_v53 }
 0x255   :  { %v265_v56 = vpop.eup %264 }
 0x256   :  { %v239_v58 = vmul.f32 0.6931472, %v265_v56 }
 0x258   :  { %v240_v59 = vsub.f32 %v255_v57, %v239_v58 }
 0x25a   :  { %v241_v60 = vmul.f32 %v254_v43, %v240_v59 }
 0x25c   :  { %242 = vadd.xlane.f32.xlu0 %v241_v60 }
 0x2cf   :  { %v243_v61 = vpop.xlane.xlu0 %242 }
 0x2d0   :  { %248 = vst [vmem:[%s340_s2 + $0x18] sm:$0xff] %v243_v61 }
 0x2d1   :  { %253 = vsyncpa [#allocation3], 1 }

</bundles_post_ra>
